<compile_context>
chip_gen: v7x
topology: tpu7x:2x2x1
jax: 0.10.0
libtpu: 0.0.40
codegen_flags: <defaults>
</compile_context>

<pallas_src>
import functools

import jax
import jax.numpy as jnp
from jax.experimental import pallas as pl
from jax.experimental.pallas import tpu as pltpu

_BN_EPS = 1e-5
_LANE = 128


def _round_up(n, m):
    return ((n + m - 1) // m) * m


def _fold_bn(gamma, beta, mean, var, eps=_BN_EPS):
    scale = gamma / jnp.sqrt(var + eps)
    bias = beta - mean * scale
    return scale, bias


def _tpu_budget():
    """Generation-aware (vmem_limit_bytes, max M tile).  v7x has 64 MiB VMEM/TC."""
    vmem_bytes = 128 * 1024 * 1024
    try:
        info_fn = getattr(pltpu, "get_tpu_info", None)
        if info_fn is not None:
            vmem_bytes = int(getattr(info_fn(), "vmem_capacity_bytes", vmem_bytes))
    except Exception:
        pass
    if vmem_bytes <= 64 * 1024 * 1024:          # v7x-class TensorCore
        return 40 * 1024 * 1024, 512
    return 48 * 1024 * 1024, 1024               # v5e / v6e (128 MiB physical)


# --------------------------- Kernel A: 1x1 conv ----------------------------- #

def _mm_bias_relu_kernel(x_ref, w_ref, b_ref, o_ref, acc_ref):
    @pl.when(pl.program_id(1) == 0)
    def _():
        acc_ref[...] = jnp.zeros_like(acc_ref)

    acc_ref[...] += jnp.dot(x_ref[...], w_ref[...],
                            preferred_element_type=jnp.float32)

    @pl.when(pl.program_id(1) == pl.num_programs(1) - 1)
    def _():
        o_ref[...] = jnp.maximum(acc_ref[...] + b_ref[...], 0.0).astype(o_ref.dtype)


def _choose_tile_m(M, max_tm):
    # prefer a big tile that divides M and still leaves >= 2 grid steps (megacore)
    for t in (1024, 512, 256, 128):
        if t <= max_tm and M % t == 0 and M // t >= 2:
            return t
    for t in (1024, 512, 256, 128):
        if t <= max_tm and M % t == 0:
            return t
    return min(max_tm, max(16, _round_up(M, 16)))  # ragged last block, Pallas masks it


def _choose_tile_k(K):
    if K <= 512:
        return K
    for tk in (512, 256, 128):
        if K % tk == 0:
            return tk
    return K


def matmul_bias_relu(x, w, b, *, out_dtype, max_tm, vmem_limit):
    """relu(x @ w + b) with BN scale folded into w.  x:(M,K) bf16, w:(K,Cp) bf16, b:(1,Cp) f32."""
    M, K = x.shape
    Cout = w.shape[1]
    tm = _choose_tile_m(M, max_tm)
    tk = _choose_tile_k(K)
    grid = (pl.cdiv(M, tm), pl.cdiv(K, tk))
    return pl.pallas_call(
        _mm_bias_relu_kernel,
        out_shape=jax.ShapeDtypeStruct((M, Cout), out_dtype),
        grid=grid,
        in_specs=[
            pl.BlockSpec((tm, tk), lambda i, k: (i, k)),
            pl.BlockSpec((tk, Cout), lambda i, k: (k, 0)),
            pl.BlockSpec((1, Cout), lambda i, k: (0, 0)),
        ],
        out_specs=pl.BlockSpec((tm, Cout), lambda i, k: (i, 0)),
        scratch_shapes=[pltpu.VMEM((tm, Cout), jnp.float32)],
        compiler_params=pltpu.CompilerParams(
            dimension_semantics=("parallel", "arbitrary"),
            vmem_limit_bytes=vmem_limit,
        ),
    )(x, w, b)


# --------------- Kernel B: fused 3x3 conv + 1x1 conv + shortcut -------------- #

def _choose_row_block(Ho, Wo, Wp, target=256, cap=2048):
    """Output rows per grid step: R | Ho, (R*Wo) sublane-friendly, R*Wp >= target."""
    best = None
    for r in range(1, Ho + 1):
        if Ho % r:
            continue
        if r != Ho and (r * Wo) % 8:
            continue
        if r * Wp > cap and best is not None:
            break
        best = r
        if r * Wp >= target:
            break
    return best or Ho


def _tail_kernel(y1p_ref, sc_ref, w2_ref, b2_ref, w3_ref, bo_ref, *rest,
                 stride, rows, Wp, Wo, downsample):
    """One (batch, row-block) step of conv3x3+BN+ReLU -> conv1x1+BN -> (+ shortcut)."""
    if downsample:
        wd_ref, o_ref = rest
    else:
        (o_ref,) = rest

    cmid = w2_ref.shape[-1]
    m_flat = rows * Wp
    base = stride * rows * pl.program_id(1)      # first padded-y1 row used by this block

    # 3x3 conv as 9 accumulated (m_flat, cmid) x (cmid, cmid) matmuls over the
    # flattened, pre-padded y1.  Rows straddling the W padding are garbage and get
    # dropped in the epilogue; every valid output row is exact.
    acc = jnp.zeros((m_flat, cmid), jnp.float32)
    for kh in range(3):
        for kw in range(3):
            start = (base + kh) * Wp + kw
            if stride == 1:
                a = y1p_ref[pl.ds(start, m_flat), :]
            else:
                a = y1p_ref[pl.ds(start, m_flat, stride=stride), :]
            acc = acc + jnp.dot(a, w2_ref[3 * kh + kw],
                                preferred_element_type=jnp.float32)
    y2 = jnp.maximum(acc + b2_ref[...], 0.0).astype(y1p_ref.dtype)    # bf16 into MXU

    # stage-3 1x1 conv (+ folded BN bias, + folded downsample-BN bias if any)
    out = jnp.dot(y2, w3_ref[...], preferred_element_type=jnp.float32) + bo_ref[...]

    # shortcut (path B)
    if downsample:
        sc = jnp.dot(sc_ref[...], wd_ref[...], preferred_element_type=jnp.float32)
    else:
        sc = sc_ref[...].astype(jnp.float32)

    # epilogue: drop W-padding garbage positions, add shortcut, store valid rows
    for r in range(rows):
        row = out[r * Wp:r * Wp + Wo, :] + sc[r * Wo:(r + 1) * Wo, :]
        o_ref[r] = row.astype(o_ref.dtype)


def bottleneck_tail(y1p, sc, w2, b2, w3, bo, wd, *, stride, rows, Wp, Wo, Ho,
                    out_dtype, vmem_limit):
    """Fused conv3x3+BN+ReLU -> conv1x1+BN -> (+ shortcut).

    y1p : (N, Hp*Wp, Cmid_p) bf16 -- stage-1 output, zero-padded in H/W, flattened.
    sc  : shortcut operand; with wd: strided/decimated x, (N, Ho*Wo, Cin);
          without wd: lane-padded residual, (N, Ho*Wo, Cout_p).
    """
    N, flat_len, cmid = y1p.shape
    cout = w3.shape[-1]
    n_rb = Ho // rows
    downsample = wd is not None

    kernel = functools.partial(_tail_kernel, stride=stride, rows=rows, Wp=Wp, Wo=Wo,
                               downsample=downsample)

    # y1p's block index is constant in rb -> the full (per-batch-item) image is
    # DMA'd once per n and stays resident across all row blocks.
    in_specs = [
        pl.BlockSpec((None, flat_len, cmid), lambda n, rb: (n, 0, 0)),
        pl.BlockSpec((None, rows * Wo, sc.shape[-1]), lambda n, rb: (n, rb, 0)),
        pl.BlockSpec(w2.shape, lambda n, rb: (0, 0, 0)),
        pl.BlockSpec(b2.shape, lambda n, rb: (0, 0)),
        pl.BlockSpec(w3.shape, lambda n, rb: (0, 0)),
        pl.BlockSpec(bo.shape, lambda n, rb: (0, 0)),
    ]
    args = [y1p, sc, w2, b2, w3, bo]
    if downsample:
        in_specs.append(pl.BlockSpec(wd.shape, lambda n, rb: (0, 0)))
        args.append(wd)

    return pl.pallas_call(
        kernel,
        out_shape=jax.ShapeDtypeStruct((N, Ho, Wo, cout), out_dtype),
        grid=(N, n_rb),
        in_specs=in_specs,
        out_specs=pl.BlockSpec((None, rows, Wo, cout), lambda n, rb: (n, rb, 0, 0)),
        compiler_params=pltpu.CompilerParams(
            dimension_semantics=("parallel", "parallel"),
            vmem_limit_bytes=vmem_limit,
        ),
    )(*args)


# --------------------------------- Module ----------------------------------- #

class BottleneckPallas:
    """Deterministically initialized Bottleneck block (inference-mode BatchNorm)."""

    def __init__(self, in_channels, out_channels, expansion=4, stride=1,
                 down_sampling=False, key=None):
        self.in_channels = in_channels
        self.out_channels = out_channels
        self.expansion = expansion
        self.stride = stride            # stride lives on the 3x3 conv (torchvision convention)
        self.down_sampling = down_sampling
        c_mid = out_channels
        c_out = out_channels * expansion
        if not down_sampling:
            assert stride == 1 and in_channels == c_out, (
                "identity shortcut requires stride == 1 and "
                "in_channels == out_channels * expansion")

        if key is None:
            key = jax.random.PRNGKey(0)
        ks = jax.random.split(key, 16)

        def conv_w(k, shape):  # PyTorch conv layout (C_out, C_in, kh, kw)
            fan_in = shape[1] * shape[2] * shape[3]
            return jax.random.normal(k, shape, jnp.float32) / jnp.sqrt(fan_in)

        def bn_params(k, c):
            kg, kb, km, kv = jax.random.split(k, 4)
            gamma = 1.0 + 0.1 * jax.random.normal(kg, (c,), jnp.float32)
            beta = 0.1 * jax.random.normal(kb, (c,), jnp.float32)
            mean = 0.1 * jax.random.normal(km, (c,), jnp.float32)
            var = 1.0 + 0.1 * jnp.abs(jax.random.normal(kv, (c,), jnp.float32))
            return gamma, beta, mean, var

        self.w1 = conv_w(ks[0], (c_mid, in_channels, 1, 1))
        self.bn1 = bn_params(ks[1], c_mid)
        self.w2 = conv_w(ks[2], (c_mid, c_mid, 3, 3))
        self.bn2 = bn_params(ks[3], c_mid)
        self.w3 = conv_w(ks[4], (c_out, c_mid, 1, 1))
        self.bn3 = bn_params(ks[5], c_out)
        if down_sampling:
            self.wd = conv_w(ks[6], (c_out, in_channels, 1, 1))
            self.bnd = bn_params(ks[7], c_out)

        self._prepare_folded()

    def _prepare_folded(self):
        """Fold BN into conv weights/biases once, lane-pad channels, cast to bf16."""
        c_mid = self.out_channels
        c_out = self.out_channels * self.expansion
        cin = self.in_channels
        c_mid_p = _round_up(c_mid, _LANE)
        c_out_p = _round_up(c_out, _LANE)
        self._cmid_p, self._cout_p = c_mid_p, c_out_p

        s1, b1 = _fold_bn(*self.bn1)
        w1m = self.w1.reshape(c_mid, cin).T * s1[None, :]
        self._w1p = jnp.pad(w1m, ((0, 0), (0, c_mid_p - c_mid))).astype(jnp.bfloat16)
        self._b1p = jnp.pad(b1, (0, c_mid_p - c_mid)).reshape(1, c_mid_p)

        s2, b2 = _fold_bn(*self.bn2)
        w2m = jnp.transpose(self.w2, (2, 3, 1, 0)) * s2[None, None, None, :]
        w2p = jnp.pad(w2m, ((0, 0), (0, 0),
                            (0, c_mid_p - c_mid), (0, c_mid_p - c_mid)))
        self._w2p = w2p.reshape(9, c_mid_p, c_mid_p).astype(jnp.bfloat16)
        self._b2p = jnp.pad(b2, (0, c_mid_p - c_mid)).reshape(1, c_mid_p)

        s3, b3 = _fold_bn(*self.bn3)
        w3m = self.w3.reshape(c_out, c_mid).T * s3[None, :]
        self._w3p = jnp.pad(w3m, ((0, c_mid_p - c_mid),
                                  (0, c_out_p - c_out))).astype(jnp.bfloat16)
        b3p = jnp.pad(b3, (0, c_out_p - c_out))

        if self.down_sampling:
            sd, bd = _fold_bn(*self.bnd)
            wdm = self.wd.reshape(c_out, cin).T * sd[None, :]
            self._wdp = jnp.pad(wdm, ((0, 0), (0, c_out_p - c_out))).astype(jnp.bfloat16)
            bo = b3p + jnp.pad(bd, (0, c_out_p - c_out))
        else:
            self._wdp = None
            bo = b3p
        self._bo = bo.reshape(1, c_out_p)

    # ------------------------- Pallas forward pass ------------------------- #
    def __call__(self, x_nchw):
        # NCHW (PyTorch convention) -> NHWC (channels on lanes) and back.
        # TODO(synk): keep activations NHWC end-to-end across blocks to drop these.
        x = jnp.transpose(x_nchw, (0, 2, 3, 1))
        out = self.forward_nhwc(x)
        return jnp.transpose(out, (0, 3, 1, 2))

    def forward_nhwc(self, x):
        N, H, W, C = x.shape
        assert C == self.in_channels
        stride = self.stride
        c_out = self.out_channels * self.expansion
        c_mid_p, c_out_p = self._cmid_p, self._cout_p
        Ho = (H - 1) // stride + 1
        Wo = (W - 1) // stride + 1
        Wp = W + 2

        vmem_limit, max_tm = _tpu_budget()
        xb = x.astype(jnp.bfloat16)

        # ---- stage 1: 1x1 conv + BN + ReLU as one big matmul ----
        y1 = matmul_bias_relu(xb.reshape(N * H * W, C), self._w1p, self._b1p,
                              out_dtype=jnp.bfloat16, max_tm=max_tm,
                              vmem_limit=vmem_limit)
        y1 = y1.reshape(N, H, W, c_mid_p)

        # ---- row blocking + spatial zero padding for the fused tail kernel ----
        rows = _choose_row_block(Ho, Wo, Wp)
        Hp = stride * Ho + 3            # covers every (kh, kw) tap of every row block
        y1p = jnp.pad(y1, ((0, 0), (1, Hp - H - 1), (1, 1), (0, 0)))
        y1p = y1p.reshape(N, Hp * Wp, c_mid_p)

        # ---- shortcut operand ----
        if self.down_sampling:
            sc = xb[:, ::stride, ::stride, :].reshape(N, Ho * Wo, C)
            wd = self._wdp
        else:
            # TODO(synk): when c_out % 128 != 0 this lane-pads x in HBM per block;
            #             pad once at the network boundary instead (no-op at real widths).
            res = xb if c_out == c_out_p else jnp.pad(
                xb, ((0, 0), (0, 0), (0, 0), (0, c_out_p - c_out)))
            sc = res.reshape(N, H * W, c_out_p)
            wd = None

        # ---- stages 2 + 3 + shortcut, fused in one kernel ----
        out = bottleneck_tail(y1p, sc, self._w2p, self._b2p, self._w3p, self._bo, wd,
                              stride=stride, rows=rows, Wp=Wp, Wo=Wo, Ho=Ho,
                              out_dtype=jnp.float32, vmem_limit=vmem_limit)
        return out[..., :c_out]

    # ----------------------- pure-JAX reference (check) -------------------- #
    def reference(self, x_nchw):
        def conv(x, w, stride, pad):
            return jax.lax.conv_general_dilated(
                x, jnp.transpose(w, (2, 3, 1, 0)),
                window_strides=(stride, stride), padding=pad,
                dimension_numbers=("NHWC", "HWIO", "NHWC"),
                precision=jax.lax.Precision.HIGHEST)

        def bn(x, p):
            gamma, beta, mean, var = p
            return gamma * (x - mean) / jnp.sqrt(var + _BN_EPS) + beta

        x = jnp.transpose(x_nchw, (0, 2, 3, 1))
        a = jax.nn.relu(bn(conv(x, self.w1, 1, "VALID"), self.bn1))
        a = jax.nn.relu(bn(conv(a, self.w2, self.stride, ((1, 1), (1, 1))), self.bn2))
        a = bn(conv(a, self.w3, 1, "VALID"), self.bn3)
        if self.down_sampling:
            b = bn(conv(x, self.wd, self.stride, "VALID"), self.bnd)
        else:
            b = x
        return jnp.transpose(a + b, (0, 3, 1, 2))


if __name__ == "__main__":
    key = jax.random.PRNGKey(0)
    kx1, kx2, kp1, kp2 = jax.random.split(key, 4)

    # Case 1: down-sampling bottleneck (first block of a stage), stride=2
    x1 = jax.random.normal(kx1, (2, 4, 16, 16), jnp.float32)  # NCHW
    blk1 = BottleneckPallas(in_channels=4, out_channels=4, expansion=4,
                            stride=2, down_sampling=True, key=kp1)
    out1 = jax.block_until_ready(blk1(x1))
    ref1 = blk1.reference(x1)
    assert out1.shape == (2, 16, 8, 8), out1.shape
    # bf16 MXU operands + bf16 y1 storage vs HIGHEST-precision f32 reference
    assert jnp.allclose(out1, ref1, rtol=3e-2, atol=3e-2)

    # Case 2: residual bottleneck (identity shortcut), stride=1
    x2 = jax.random.normal(kx2, (2, 16, 16, 16), jnp.float32)  # NCHW
    blk2 = BottleneckPallas(in_channels=16, out_channels=4, expansion=4,
                            stride=1, down_sampling=False, key=kp2)
    out2 = jax.block_until_ready(blk2(x2))
    ref2 = blk2.reference(x2)
    assert out2.shape == (2, 16, 16, 16), out2.shape
    assert jnp.allclose(out2, ref2, rtol=3e-2, atol=3e-2)

    print("KERNEL_OK")
</pallas_src>

<mosaic_0001>
module attributes {stable_mosaic.version = 11 : i64} {
  func.func @_mm_bias_relu_kernel(%arg0: i32, %arg1: i32, %arg2: memref<256x4xbf16, #tpu.memory_space<vmem>>, %arg3: memref<4x128xbf16, #tpu.memory_space<vmem>>, %arg4: memref<1x128xf32, #tpu.memory_space<vmem>>, %arg5: memref<256x128xbf16, #tpu.memory_space<vmem>>, %arg6: memref<256x128xf32, #tpu.memory_space<vmem>>) attributes {dimension_semantics = [#tpu.dimension_semantics<parallel>, #tpu.dimension_semantics<arbitrary>], iteration_bounds = array<i64: 2, 1>, scalar_prefetch = 0 : i64, scratch_operands = 1 : i64, tpu.core_type = #tpu.core_type<tc>, window_params = [{transform_indices = @transform_0, window_bounds = array<i64: 256, 4>}, {transform_indices = @transform_1, window_bounds = array<i64: 4, 128>}, {pipeline_mode = #tpu.pipeline_mode<synchronous>, transform_indices = @transform_2, window_bounds = array<i64: 1, 128>}, {transform_indices = @transform_3, window_bounds = array<i64: 256, 128>}]} {
    %c0_i32 = arith.constant 0 : i32
    %0 = arith.cmpi eq, %arg1, %c0_i32 : i32
    %1 = arith.extui %0 : i1 to i32
    %c0_i32_0 = arith.constant 0 : i32
    %2 = arith.cmpi ne, %1, %c0_i32_0 : i32
    scf.if %2 {
      %cst_10 = arith.constant 0.000000e+00 : f32
      %12 = vector.broadcast %cst_10 : f32 to vector<256x128xf32>
      %c0_11 = arith.constant 0 : index
      %c0_12 = arith.constant 0 : index
      %13 = vector.load %arg6[%c0_11, %c0_12] : memref<256x128xf32, #tpu.memory_space<vmem>>, vector<256x128xf32>
      tpu.vector_store %arg6[%c0_11, %c0_12], %12 {strides = array<i32>} : memref<256x128xf32, #tpu.memory_space<vmem>>, vector<256x128xf32>,
    } else {
    }
    %c0 = arith.constant 0 : index
    %c0_1 = arith.constant 0 : index
    %3 = vector.load %arg6[%c0, %c0_1] : memref<256x128xf32, #tpu.memory_space<vmem>>, vector<256x128xf32>
    %c0_2 = arith.constant 0 : index
    %c0_3 = arith.constant 0 : index
    %4 = vector.load %arg2[%c0_2, %c0_3] : memref<256x4xbf16, #tpu.memory_space<vmem>>, vector<256x4xbf16>
    %c0_4 = arith.constant 0 : index
    %c0_5 = arith.constant 0 : index
    %5 = vector.load %arg3[%c0_4, %c0_5] : memref<4x128xbf16, #tpu.memory_space<vmem>>, vector<4x128xbf16>
    %cst = arith.constant dense<0.000000e+00> : vector<256x128xf32>
    %6 = tpu.matmul %4, %5, %cst {dimension_numbers = #tpu.dot_dimension_numbers<[1], [0], [0], [1], [0, 0, 1, 1], [], []>} : vector<256x4xbf16>, vector<4x128xbf16>, vector<256x128xf32> -> vector<256x128xf32>
    %7 = arith.addf %3, %6 : vector<256x128xf32>
    %c0_6 = arith.constant 0 : index
    %c0_7 = arith.constant 0 : index
    %8 = vector.load %arg6[%c0_6, %c0_7] : memref<256x128xf32, #tpu.memory_space<vmem>>, vector<256x128xf32>
    tpu.vector_store %arg6[%c0_6, %c0_7], %7 {strides = array<i32>} : memref<256x128xf32, #tpu.memory_space<vmem>>, vector<256x128xf32>,
    %c0_i32_8 = arith.constant 0 : i32
    %9 = arith.cmpi eq, %arg1, %c0_i32_8 : i32
    %10 = arith.extui %9 : i1 to i32
    %c0_i32_9 = arith.constant 0 : i32
    %11 = arith.cmpi ne, %10, %c0_i32_9 : i32
    scf.if %11 {
      %c0_10 = arith.constant 0 : index
      %c0_11 = arith.constant 0 : index
      %12 = vector.load %arg6[%c0_10, %c0_11] : memref<256x128xf32, #tpu.memory_space<vmem>>, vector<256x128xf32>
      %c0_12 = arith.constant 0 : index
      %c0_13 = arith.constant 0 : index
      %13 = vector.load %arg4[%c0_12, %c0_13] : memref<1x128xf32, #tpu.memory_space<vmem>>, vector<1x128xf32>
      %14 = vector.broadcast %13 : vector<1x128xf32> to vector<256x128xf32>
      %15 = arith.addf %12, %14 : vector<256x128xf32>
      %cst_14 = arith.constant 0.000000e+00 : f32
      %16 = vector.broadcast %cst_14 : f32 to vector<256x128xf32>
      %17 = arith.maximumf %15, %16 : vector<256x128xf32>
      %18 = arith.truncf %17 : vector<256x128xf32> to vector<256x128xbf16>
      %c0_15 = arith.constant 0 : index
      %c0_16 = arith.constant 0 : index
      %19 = vector.load %arg5[%c0_15, %c0_16] : memref<256x128xbf16, #tpu.memory_space<vmem>>, vector<256x128xbf16>
      tpu.vector_store %arg5[%c0_15, %c0_16], %18 {strides = array<i32>} : memref<256x128xbf16, #tpu.memory_space<vmem>>, vector<256x128xbf16>,
    } else {
    }
    return
  }
  func.func @transform_0(%arg0: i32, %arg1: i32) -> (i32, i32) {
    %c0_i32 = arith.constant 0 : i32
    return %arg0, %arg1 : i32, i32
  }
  func.func @transform_1(%arg0: i32, %arg1: i32) -> (i32, i32) {
    %c0_i32 = arith.constant 0 : i32
    %c0_i32_0 = arith.constant 0 : i32
    return %arg1, %c0_i32 : i32, i32
  }
  func.func @transform_2(%arg0: i32, %arg1: i32) -> (i32, i32) {
    %c0_i32 = arith.constant 0 : i32
    %c0_i32_0 = arith.constant 0 : i32
    %c0_i32_1 = arith.constant 0 : i32
    return %c0_i32, %c0_i32_0 : i32, i32
  }
  func.func @transform_3(%arg0: i32, %arg1: i32) -> (i32, i32) {
    %c0_i32 = arith.constant 0 : i32
    %c0_i32_0 = arith.constant 0 : i32
    return %arg0, %c0_i32 : i32, i32
  }
}

</mosaic_0001>

<bundles_post_ra>
// kernel: tpu_custom_call.1
= control target key start
LH: loop header
LB: loop body
LE: loop exit
PB: predicated region body
PF: predicated region fallthrough
CT: control target
= control target key end

     0   :  { %8 = vsyncpa [#allocation4], 0  ;;  %s1689_s0 = inlined_call_operand.vmem [shape: bf16[512,4], index: 0, kind: input, shape index: {}]   ;;  %s1690_s1 = inlined_call_operand.vmem [shape: bf16[4,128], index: 1, kind: input, shape index: {}]   ;;  %s1691_s2 = inlined_call_operand.vmem [shape: f32[1,128], index: 2, kind: input, shape index: {}]   ;;  %s1692_s3 = inlined_call_operand.hbm [shape: bf16[512,128], index: 3, kind: output, shape index: {}]  }
   0x1   :  { %10 = vsyncpa [#allocation4 + $0x1], 0  ;;  %s1478_s12 = smov 0   ;;  %s1480_s13 = smov 0  }
   0x2   :  { %s1482_s14 = smov 0   ;;  %s1484_s15 = smov 0  }
   0x3   :  { %s1486_s16 = smov 0   ;;  %s1488_s17 = smov 0  }
   0x4 LB: > { %s1040_s18 = sadd.s32 4294967295, %s1453_s17   ;;  %s1041_s19 = sadd.s32 4294967294, %s1453_s17   ;;  %s1453_s17 = sphi %s1488_s17, %s16_s17   ;;  %s1449_s16 = sphi %s1486_s16, %s1699_s16   ;;  %s1445_s15 = sphi %s1484_s15, %s1698_s15   ;;  %s1441_s14 = sphi %s1482_s14, %s1697_s14   ;;  %s1437_s13 = sphi %s1480_s13, %s1696_s13   ;;  %s1433_s12 = sphi %s1478_s12, %s1695_s12  }
   0x5   : > { %s28_s20 = sadd.s32 1, %s1449_s16  ;;  %s110_s21 = sadd.s32 1, %s1441_s14 }
   0x6   : > { %p30_p0 = scmp.ge.s32.totalorder %s28_s20, 2  ;;  %p120_p1 = scmp.ne.s32.totalorder %s1441_s14, %s1437_s13 }
   0x7   : > { %p121_p2 = scmp.eq.s32.totalorder %s1040_s18, 1  ;;  %p126_p3 = scmp.ne.s32.totalorder %s1437_s13, %s1433_s12 }
   0x8   : > { %s1701_s20 = smov (%p30_p0, %s28_s20), 0  ;;  %p127_p5 = scmp.eq.s32.totalorder %s1041_s19, 1 }
   0x9   : > { %p1518_p4 = por %p121_p2, %p120_p1  ;;  %s107_s23 = ssub.s32 %s1449_s16, %s1701_s20 }
   0xa   : > { %p1045_p6 = scmp.ge.s32.totalorder %s1453_s17, 1  ;;  %p108_p7 = scmp.eq.s32.totalorder %s107_s23, 0 }
   0xb   : > { %p1525_p8 = por %p127_p5, %p126_p3  ;;  %p167_p9 = scmp.lt.s32.totalorder %s1453_s17, 3 }
   0xc   : > { %s1531_s25 = scalar_select %p108_p7, %s1441_s14, %s110_s21  }
   0xd   : > { %p168_p10 = pnand %p1045_p6, %p167_p9 }
   0xe   : > { %v313_v0 = vld [vmem:[%s1690_s1] sm:$0x3] (!%p168_p10)  ;;  %vm443_vm0 = vcmask (!%p168_p10), 1041408   ;;  %s1047_s28 = sshll.u32 (!%p168_p10), %s1445_s15, 5  ;;  %vm394_vm1 = vcmask (!%p168_p10), 31744   ;;  %s195_s8 = sand.u32 (!%p168_p10), 1, %s1437_s13  }
   0xf   : > { %171 = sbr.rel (%p168_p10) target bundleno = 288 (0x120), region = 32  ;;  %1300 = vmatprep.subr.msk.bf16.mxu0 (!%p168_p10), %vm443_vm0, %v313_v0  ;;  %1301 = vmatprep.subr.msk.bf16.mxu1 (!%p168_p10), %vm443_vm0, %v313_v0  ;;  %v445_v1 = vsel (!%p168_p10), %vm443_vm0, %v313_v0, 0  ;;  %p199_p11 = scmp.lt.s32.totalorder (!%p168_p10), %s1047_s28, 63  ;;  %v1577_v18 = vld [vmem:[%s1691_s2] ss:$0 sm:$0xff] (!%p168_p10) }
  0x10   : > { %1265 = vmatpush3.bf16.msra.mxu0 (!%p168_p10), %v445_v1  ;;  %1299 = vmatpush3.bf16.msra.mxu1 (!%p168_p10), %v445_v1  ;;  %s1046_s9 = sshll.u32 (!%p168_p10), %s195_s8, 7  ;;  %s1151_s11 = sshll.u32 (!%p168_p10), %s1445_s15, 11 }
  0x11   : > { %s1590_s10 = scalar_lea.vmem (!%p168_p10), [#allocation3], %s1046_s9  ;;  %s1633_s23 = scalar_lea.hbm (!%p168_p10), %s1692_s3, %s1151_s11 }
  0x12   : > { %s952_s18 = sshll.u32 (!%p168_p10), %s1590_s10, 4  ;;  %s1643_s15 = scalar_lea.sflag (!%p168_p10), [#allocation4], %s195_s8  ;;  %s1635_s18 = int_to_ptr.vmem [resolvable:$true] %s952_s18 }
  0x13   : > { %s1375_s26 = scalar_lea.vmem (!%p168_p10), %s1635_s18, 2048  ;;  %s1455_s27 = smov (!%p168_p10), [#allocation3]  }
  0x14   : > { %p1376_p12 = scmp.ne.s32.totalorder (!%p168_p10), %s1635_s18, %s1375_s26 }
  0x16   : > { %s1703_s28 = smov (!%p199_p11, %s1047_s28), 63  ;;  %p1377_p13 = pnand %p1376_p12, %p1518_p4 }
  0x17   : > { %s1048_s29 = sshll.u32 %s1703_s28, 2  ;;  %s1379_s28 = sshll.u32 %s1455_s27, 4  ;;  %s1380_s28 = int_to_ptr.vmem [resolvable:$false] %s1379_s28 }
  0x18   : > { %s1540_s5 = scalar_lea.vmem %s1689_s0, %s1048_s29  ;;  %p1378_p0 = pneg %p1377_p13 }
  0x19   : > { %v1359_v2 = vld [vmem:[%s1540_s5] sm:$0xff]   ;;  %v1361_v4 = vld [vmem:[%s1540_s5 + $0x8] sm:$0xff]   ;;  %v1363_v6 = vld [vmem:[%s1540_s5 + $0x10] sm:$0xff]   ;;  %s1381_s29 = scalar_lea.vmem %s1380_s28, 4096  ;;  %p1382_p1 = scmp.lt.s32.totalorder %s1635_s18, %s1380_s28 }
  0x1a   : > { %v1360_v3 = vld [vmem:[%s1540_s5 + $0x40] sm:$0xff]   ;;  %1266 = vmatprep.mubr.msk.bf16.mxu0 %vm394_vm1, %v1359_v2  ;;  %v1362_v5 = vld [vmem:[%s1540_s5 + $0x48] sm:$0xff]   ;;  %v1364_v7 = vld [vmem:[%s1540_s5 + $0x50] sm:$0xff]   ;;  %p1383_p2 = scmp.lt.s32.totalorder %s1381_s29, %s1375_s26 }
  0x1b   : > { %1282 = vmatprep.mubr.msk.bf16.mxu1 %vm394_vm1, %v1360_v3  ;;  %1267 = vmatmul.mubr.msk.bf16.vlgmr.msra.gmra.mrb[0].mxu0 %vm394_vm1, %v1361_v4  ;;  %v1365_v8 = vld [vmem:[%s1540_s5 + $0x18] sm:$0xff]   ;;  %v1367_v10 = vld [vmem:[%s1540_s5 + $0x20] sm:$0xff]   ;;  %v1369_v12 = vld [vmem:[%s1540_s5 + $0x28] sm:$0xff]  }
  0x1c   : > { %1283 = vmatmul.mubr.msk.bf16.vlgmr.msra.gmra.mrb[0].mxu1 %vm394_vm1, %v1362_v5  ;;  %1270 = vmatprep.mubr.msk.bf16.mxu0 %vm394_vm1, %v1363_v6  ;;  %v1366_v9 = vld [vmem:[%s1540_s5 + $0x58] sm:$0xff]   ;;  %v1368_v11 = vld [vmem:[%s1540_s5 + $0x60] sm:$0xff]   ;;  %v1370_v13 = vld [vmem:[%s1540_s5 + $0x68] sm:$0xff]   ;;  %p1384_p3 = por %p1383_p2, %p1382_p1 }
  0x1d   : > { %1286 = vmatprep.mubr.msk.bf16.mxu1 %vm394_vm1, %v1364_v7  ;;  %v1371_v14 = vld [vmem:[%s1540_s5 + $0x30] sm:$0xff]   ;;  %v1373_v16 = vld [vmem:[%s1540_s5 + $0x38] sm:$0xff]  }
  0x1e   : > { %v1372_v15 = vld [vmem:[%s1540_s5 + $0x70] sm:$0xff]   ;;  %v1374_v17 = vld [vmem:[%s1540_s5 + $0x78] sm:$0xff]   ;;  %p1385_p5 = pnand %p1384_p3, %p1378_p0 }
  0x23   : > { %1271 = vmatmul.mubr.msk.bf16.gmra.mrb[4].mxu0 %vm394_vm1, %v1365_v8 }
  0x24   : > { %1287 = vmatmul.mubr.msk.bf16.gmra.mrb[4].mxu1 %vm394_vm1, %v1366_v9  ;;  %1274 = vmatprep.mubr.msk.bf16.mxu0 %vm394_vm1, %v1367_v10 }
  0x25   : > { %1290 = vmatprep.mubr.msk.bf16.mxu1 %vm394_vm1, %v1368_v11 }
  0x2b   : > { %1275 = vmatmul.mubr.msk.bf16.gmra.mrb[8].mxu0 %vm394_vm1, %v1369_v12 }
  0x2c   : > { %1291 = vmatmul.mubr.msk.bf16.gmra.mrb[8].mxu1 %vm394_vm1, %v1370_v13  ;;  %1278 = vmatprep.mubr.msk.bf16.mxu0 %vm394_vm1, %v1371_v14 }
  0x2d   : > { %1294 = vmatprep.mubr.msk.bf16.mxu1 %vm394_vm1, %v1372_v15 }
  0x33   : > { %1279 = vmatmul.mubr.msk.bf16.gmra.mrb[12].mxu0 %vm394_vm1, %v1373_v16 }
  0x34   : > { %1295 = vmatmul.mubr.msk.bf16.gmra.mrb[12].mxu1 %vm394_vm1, %v1374_v17 }
  0xee   : > { %v1268_v19 = vpop.f32.mrb[0].mxu0 }
  0xef   : > { %v716_v20 = vadd.f32 %v1268_v19, %v1577_v18  ;;  %v1284_v21 = vpop.f32.mrb[0].mxu1  ;;  %v481_v22 = vpop.f32.mrb[1].mxu0 }
  0xf0   : > { %v732_v23 = vadd.f32 %v1284_v21, %v1577_v18  ;;  %v714_v24 = vadd.f32 %v1577_v18, %v481_v22  ;;  %v545_v25 = vpop.f32.mrb[1].mxu1  ;;  %v1269_v26 = vpop.f32.mrb[2].mxu0 }
  0xf1   : > { %v730_v27 = vadd.f32 %v1577_v18, %v545_v25  ;;  %v717_v28 = vadd.f32 %v1269_v26, %v1577_v18  ;;  %v1285_v29 = vpop.f32.mrb[2].mxu1  ;;  %v484_v30 = vpop.f32.mrb[3].mxu0  ;;  %v748_v34 = vmax.f32 %v716_v20, 0.0 }
  0xf2   : > { %v733_v31 = vadd.f32 %v1285_v29, %v1577_v18  ;;  %v715_v32 = vadd.f32 %v1577_v18, %v484_v30  ;;  %v548_v33 = vpop.f32.mrb[3].mxu1  ;;  %v764_v37 = vmax.f32 %v732_v23, 0.0  ;;  %v746_v38 = vmax.f32 %v714_v24, 0.0 }
  0xf3   : > { %v749_v35 = vmax.f32 %v717_v28, 0.0  ;;  %v731_v36 = vadd.f32 %v1577_v18, %v548_v33  ;;  %v762_v41 = vmax.f32 %v730_v27, 0.0 }
  0xf4   : > { %v765_v39 = vmax.f32 %v733_v31, 0.0  ;;  %v747_v40 = vmax.f32 %v715_v32, 0.0 }
  0xf5   : > { %v1160_v42 = vpack.c.bf16 %v749_v35, %v748_v34  ;;  %v763_v43 = vmax.f32 %v731_v36, 0.0 }
  0xf6   : > { %v1200_v44 = vpack.c.bf16 %v765_v39, %v764_v37  ;;  %v1155_v45 = vpack.c.bf16 %v747_v40, %v746_v38  ;;  %v1272_v46 = vpop.f32.mrb[4].mxu0 }
  0xf7   : > { %1232 = vst [vmem:[%s1590_s10 + $0x8] sm:$0xff] %v1160_v42   ;;  %v1195_v47 = vpack.c.bf16 %v763_v43, %v762_v41  ;;  %v720_v48 = vadd.f32 %v1272_v46, %v1577_v18  ;;  %v1288_v49 = vpop.f32.mrb[4].mxu1  ;;  %v497_v50 = vpop.f32.mrb[5].mxu0 }
  0xf8   : > { %1240 = vst [vmem:[%s1590_s10 + $0x48] sm:$0xff] %v1200_v44   ;;  %1156 = vst [vmem:[%s1590_s10] sm:$0xff] %v1155_v45   ;;  %v736_v51 = vadd.f32 %v1288_v49, %v1577_v18  ;;  %v718_v52 = vadd.f32 %v1577_v18, %v497_v50  ;;  %v561_v53 = vpop.f32.mrb[5].mxu1  ;;  %v1273_v54 = vpop.f32.mrb[6].mxu0 }
  0xf9   : > { %1239 = vst [vmem:[%s1590_s10 + $0x40] sm:$0xff] %v1195_v47   ;;  %v734_v55 = vadd.f32 %v1577_v18, %v561_v53  ;;  %v721_v56 = vadd.f32 %v1273_v54, %v1577_v18  ;;  %v1289_v57 = vpop.f32.mrb[6].mxu1  ;;  %v500_v58 = vpop.f32.mrb[7].mxu0  ;;  %v752_v62 = vmax.f32 %v720_v48, 0.0 }
  0xfa   : > { %v737_v59 = vadd.f32 %v1289_v57, %v1577_v18  ;;  %v719_v60 = vadd.f32 %v1577_v18, %v500_v58  ;;  %v564_v61 = vpop.f32.mrb[7].mxu1  ;;  %v768_v1 = vmax.f32 %v736_v51, 0.0  ;;  %v750_v2 = vmax.f32 %v718_v52, 0.0 }
  0xfb   : > { %v753_v63 = vmax.f32 %v721_v56, 0.0  ;;  %v735_v0 = vadd.f32 %v1577_v18, %v564_v61  ;;  %v766_v5 = vmax.f32 %v734_v55, 0.0 }
  0xfc   : > { %v769_v3 = vmax.f32 %v737_v59, 0.0  ;;  %v751_v4 = vmax.f32 %v719_v60, 0.0 }
  0xfd   : > { %v1170_v6 = vpack.c.bf16 %v753_v63, %v752_v62  ;;  %v767_v7 = vmax.f32 %v735_v0, 0.0 }
  0xfe   : > { %v1210_v8 = vpack.c.bf16 %v769_v3, %v768_v1  ;;  %v1165_v9 = vpack.c.bf16 %v751_v4, %v750_v2  ;;  %v1276_v10 = vpop.f32.mrb[8].mxu0 }
  0xff   : > { %1234 = vst [vmem:[%s1590_s10 + $0x18] sm:$0xff] %v1170_v6   ;;  %v1205_v11 = vpack.c.bf16 %v767_v7, %v766_v5  ;;  %v724_v12 = vadd.f32 %v1276_v10, %v1577_v18  ;;  %v1292_v13 = vpop.f32.mrb[8].mxu1  ;;  %v513_v14 = vpop.f32.mrb[9].mxu0 }
 0x100   : > { %1242 = vst [vmem:[%s1590_s10 + $0x58] sm:$0xff] %v1210_v8   ;;  %1233 = vst [vmem:[%s1590_s10 + $0x10] sm:$0xff] %v1165_v9   ;;  %v740_v15 = vadd.f32 %v1292_v13, %v1577_v18  ;;  %v722_v16 = vadd.f32 %v1577_v18, %v513_v14  ;;  %v577_v17 = vpop.f32.mrb[9].mxu1  ;;  %v1277_v19 = vpop.f32.mrb[10].mxu0 }
 0x101   : > { %1241 = vst [vmem:[%s1590_s10 + $0x50] sm:$0xff] %v1205_v11   ;;  %v738_v20 = vadd.f32 %v1577_v18, %v577_v17  ;;  %v725_v21 = vadd.f32 %v1277_v19, %v1577_v18  ;;  %v1293_v22 = vpop.f32.mrb[10].mxu1  ;;  %v516_v23 = vpop.f32.mrb[11].mxu0  ;;  %v756_v27 = vmax.f32 %v724_v12, 0.0 }
 0x102   : > { %v741_v24 = vadd.f32 %v1293_v22, %v1577_v18  ;;  %v723_v25 = vadd.f32 %v1577_v18, %v516_v23  ;;  %v580_v26 = vpop.f32.mrb[11].mxu1  ;;  %v772_v30 = vmax.f32 %v740_v15, 0.0  ;;  %v754_v31 = vmax.f32 %v722_v16, 0.0 }
 0x103   : > { %v757_v28 = vmax.f32 %v725_v21, 0.0  ;;  %v739_v29 = vadd.f32 %v1577_v18, %v580_v26  ;;  %v770_v34 = vmax.f32 %v738_v20, 0.0 }
 0x104   : > { %v773_v32 = vmax.f32 %v741_v24, 0.0  ;;  %v755_v33 = vmax.f32 %v723_v25, 0.0 }
 0x105   : > { %v1180_v35 = vpack.c.bf16 %v757_v28, %v756_v27  ;;  %v771_v36 = vmax.f32 %v739_v29, 0.0 }
 0x106   : > { %v1220_v37 = vpack.c.bf16 %v773_v32, %v772_v30  ;;  %v1175_v38 = vpack.c.bf16 %v755_v33, %v754_v31  ;;  %v1280_v39 = vpop.f32.mrb[12].mxu0 }
 0x107   : > { %1236 = vst [vmem:[%s1590_s10 + $0x28] sm:$0xff] %v1180_v35   ;;  %v1215_v40 = vpack.c.bf16 %v771_v36, %v770_v34  ;;  %v728_v41 = vadd.f32 %v1280_v39, %v1577_v18  ;;  %v1296_v42 = vpop.f32.mrb[12].mxu1  ;;  %v529_v43 = vpop.f32.mrb[13].mxu0 }
 0x108   : > { %1244 = vst [vmem:[%s1590_s10 + $0x68] sm:$0xff] %v1220_v37   ;;  %1235 = vst [vmem:[%s1590_s10 + $0x20] sm:$0xff] %v1175_v38   ;;  %v744_v44 = vadd.f32 %v1296_v42, %v1577_v18  ;;  %v726_v45 = vadd.f32 %v1577_v18, %v529_v43  ;;  %v593_v46 = vpop.f32.mrb[13].mxu1  ;;  %v1281_v47 = vpop.f32.mrb[14].mxu0 }
 0x109   : > { %1243 = vst [vmem:[%s1590_s10 + $0x60] sm:$0xff] %v1215_v40   ;;  %v742_v48 = vadd.f32 %v1577_v18, %v593_v46  ;;  %v729_v49 = vadd.f32 %v1281_v47, %v1577_v18  ;;  %v1297_v50 = vpop.f32.mrb[14].mxu1  ;;  %v532_v51 = vpop.f32.mrb[15].mxu0  ;;  %v760_v55 = vmax.f32 %v728_v41, 0.0 }
 0x10a   : > { %v745_v52 = vadd.f32 %v1297_v50, %v1577_v18  ;;  %v727_v53 = vadd.f32 %v1577_v18, %v532_v51  ;;  %v596_v54 = vpop.f32.mrb[15].mxu1  ;;  %v776_v58 = vmax.f32 %v744_v44, 0.0  ;;  %v758_v59 = vmax.f32 %v726_v45, 0.0 }
 0x10b   : > { %v761_v56 = vmax.f32 %v729_v49, 0.0  ;;  %v743_v57 = vadd.f32 %v1577_v18, %v596_v54  ;;  %v774_v62 = vmax.f32 %v742_v48, 0.0 }
 0x10c   : > { %v777_v60 = vmax.f32 %v745_v52, 0.0  ;;  %v759_v61 = vmax.f32 %v727_v53, 0.0 }
 0x10d   : > { %v1190_v63 = vpack.c.bf16 %v761_v56, %v760_v55  ;;  %v775_v0 = vmax.f32 %v743_v57, 0.0 }
 0x10e   : > { %v1230_v1 = vpack.c.bf16 %v777_v60, %v776_v58  ;;  %v1185_v2 = vpack.c.bf16 %v759_v61, %v758_v59 }
 0x10f   : > { %1238 = vst [vmem:[%s1590_s10 + $0x38] sm:$0xff] %v1190_v63   ;;  %v1225_v18 = vpack.c.bf16 %v775_v0, %v774_v62 }
 0x110   : > { %1246 = vst [vmem:[%s1590_s10 + $0x78] sm:$0xff] %v1230_v1   ;;  %1237 = vst [vmem:[%s1590_s10 + $0x30] sm:$0xff] %v1185_v2  }
 0x111   : > { %1245 = vst [vmem:[%s1590_s10 + $0x70] sm:$0xff] %v1225_v18  }
 0x112   : > { %1388 = shalt.err (!%p1385_p5)
}
 0x113   : > { %s1389_s30 = scalar_lea.hbm %s1633_s23, 2048  ;;  %s1393_s6 = scalar_lea.hbm %s1692_s3, 4096 }
 0x114   : > { %p1390_p6 = scmp.ne.s32.totalorder %s1633_s23, %s1389_s30  ;;  %p1394_p10 = scmp.lt.u32.totalorder %s1633_s23, %s1692_s3 }
 0x115   : > { %p1395_p11 = scmp.lt.u32.totalorder %s1393_s6, %s1389_s30  ;;  %p1397_p13 = scmp.lt.u32.totalorder %s1389_s30, %s1633_s23 }
 0x116   : > { %p1391_p7 = pnand %p1390_p6, %p1518_p4 }
 0x117   : > { %p1396_p12 = por %p1395_p11, %p1394_p10 }
 0x118   : > { %p1392_p9 = pneg %p1391_p7 }
 0x119   : > { %p1398_p0 = por %p1397_p13, %p1396_p12 }
 0x11b   : > { %p1399_p1 = pnand %p1398_p0, %p1392_p9 }
 0x11d   : > { %1402 = shalt.err (!%p1399_p1)
}
 0x11e   : > { %s1456_s9 = smov 64   ;;  %s1457_s10 = smov 4  }
 0x11f   : > { %1302 = dma.vmem_to_hbm [thread:$0]  (%p1518_p4), %s1635_s18, 2048, %s1633_s23, %s1643_s15, %s1456_s9, %s1456_s9, %s1457_s10  }
 0x120 PF: > { %p1308_p2 = scmp.ge.s32.totalorder %s1453_s17, 2  ;;  %s967_s11 = sand.u32 1, %s1433_s12  }
 0x121   : > { %s968_s19 = scalar_lea.sflag [#allocation4], %s967_s11 }
 0x122   : > { %p1305_p3 = pnand %p1308_p2, %p1525_p8 }
 0x124   : > { %1428 = dma.done.wait (!%p1305_p3), %s968_s19, 2048  }
 0x125   : > { %1430 = vsyncadd (!%p1305_p3), %s968_s19, 4294965248  ;;  %s16_s17 = sadd.s32 1, %s1453_s17   ;;  %s1695_s12 = smov %s1437_s13 }
 0x126   : > { %p13_p5 = scmp.ge.s32.totalorder %s16_s17, 4   ;;  %s1696_s13 = smov %s1441_s14 }
 0x127   : > { %s1697_s14 = smov %s1531_s25  ;;  %s1698_s15 = smov %s1449_s16 }
 0x128   : > { %s1699_s16 = smov %s1701_s20  ;;  %15 = sbr.rel (!%p13_p5) target bundleno = 4 (0x4), region = 78 }
 0x12f   :  { %973 = vsyncpa [#allocation4], 1 }
 0x130   :  { %975 = vsyncpa [#allocation4 + $0x1], 1 }

</bundles_post_ra>
